<compile_context>
chip_gen: v6e
topology: v6e:2x2x1
jax: 0.10.0
libtpu: 0.0.40
codegen_flags: <defaults>
</compile_context>

<pallas_src>
import jax
import jax.numpy as jnp
from jax.experimental import pallas as pl
from jax.experimental.pallas import tpu as pltpu


def _round_up(v, m):
    return ((v + m - 1) // m) * m


def mlp_kernel(x_ref, w1_ref, w23_ref, b_ref, o_ref):
    x = x_ref[...]                       # [TM, 768] bf16
    b = b_ref[...]                       # [3, 128]  f32
    b1 = b[0:1, :]                       # [1, 128]
    b2 = b[1:2, :]                       # [1, 128] (cols 64..127 are zero)
    b3 = b[2:3, :]                       # [1, 128] (cols 8..127 are zero)

    # fc1 + ReLU  (768 -> 128)
    h1 = jnp.dot(x, w1_ref[...], preferred_element_type=jnp.float32) + b1
    h1 = jnp.maximum(h1, 0.0).astype(jnp.bfloat16)

    # fc2 + ReLU  (128 -> 64, padded to 128 lanes; padded cols stay 0 because
    # padded weight cols and bias cols are 0 and ReLU(0) = 0)
    h2 = jnp.dot(h1, w23_ref[0], preferred_element_type=jnp.float32) + b2
    h2 = jnp.maximum(h2, 0.0).astype(jnp.bfloat16)

    # fc3  (64 -> 8, padded to 128 lanes; wrapper slices the first 8)
    out = jnp.dot(h2, w23_ref[1], preferred_element_type=jnp.float32) + b3
    o_ref[...] = out.astype(o_ref.dtype)


def eight_class_model_forward(x, packed_params, tm=256):
    """x: [B, 768] float32 -> logits [B, 8] float32."""
    w1, w23, bias = packed_params
    B = x.shape[0]

    # Batch tile: multiple of 8 sublanes, capped at `tm`.
    TM = min(tm, _round_up(B, 8))
    Bp = _round_up(B, TM)

    xb = x.astype(jnp.bfloat16)
    if Bp != B:
        xb = jnp.pad(xb, ((0, Bp - B), (0, 0)))

    out_padded = pl.pallas_call(
        mlp_kernel,
        out_shape=jax.ShapeDtypeStruct((Bp, 128), jnp.float32),
        grid=(Bp // TM,),
        in_specs=[
            pl.BlockSpec((TM, 768), lambda i: (i, 0)),         # x: streams with grid
            pl.BlockSpec((768, 128), lambda i: (0, 0)),        # w1: resident
            pl.BlockSpec((2, 128, 128), lambda i: (0, 0, 0)),  # w2|w3: resident
            pl.BlockSpec((3, 128), lambda i: (0, 0)),          # packed biases: resident
        ],
        out_specs=pl.BlockSpec((TM, 128), lambda i: (i, 0)),
        compiler_params=pltpu.CompilerParams(
            dimension_semantics=("parallel",),
        ),
    )(xb, w1, w23, bias)

    return out_padded[:B, :8]


def init_raw_params(key):
    """nn.Linear-default-style init (U[-1/sqrt(fan_in), +1/sqrt(fan_in)]), f32.

    Weights stored as [in, out] (pre-transposed vs PyTorch's [out, in])."""
    dims = [(768, 128), (128, 64), (64, 8)]
    params = []
    for (fan_in, fan_out) in dims:
        key, kw, kb = jax.random.split(key, 3)
        bound = 1.0 / (fan_in ** 0.5)
        w = jax.random.uniform(kw, (fan_in, fan_out), jnp.float32, -bound, bound)
        b = jax.random.uniform(kb, (fan_out,), jnp.float32, -bound, bound)
        params += [w, b]
    return tuple(params)


def pack_params(raw):
    """Pack raw f32 params into the kernel layout (bf16 weights, padded)."""
    w1, b1, w2, b2, w3, b3 = raw

    w1_p = w1.astype(jnp.bfloat16)                                   # [768,128]

    w2_p = jnp.zeros((128, 128), jnp.float32).at[:, :64].set(w2)     # pad cols
    w3_p = jnp.zeros((128, 128), jnp.float32).at[:64, :8].set(w3)    # pad rows+cols
    w23 = jnp.stack([w2_p, w3_p], axis=0).astype(jnp.bfloat16)       # [2,128,128]

    bias = jnp.zeros((3, 128), jnp.float32)
    bias = bias.at[0, :128].set(b1)
    bias = bias.at[1, :64].set(b2)
    bias = bias.at[2, :8].set(b3)
    return (w1_p, w23, bias)


def reference_forward(x, raw):
    """Pure-JAX reference with matching bf16 input / f32-accum semantics."""
    w1, b1, w2, b2, w3, b3 = raw
    xb = x.astype(jnp.bfloat16)
    h1 = jnp.dot(xb, w1.astype(jnp.bfloat16),
                 preferred_element_type=jnp.float32) + b1
    h1 = jnp.maximum(h1, 0.0).astype(jnp.bfloat16)
    h2 = jnp.dot(h1, w2.astype(jnp.bfloat16),
                 preferred_element_type=jnp.float32) + b2
    h2 = jnp.maximum(h2, 0.0).astype(jnp.bfloat16)
    return jnp.dot(h2, w3.astype(jnp.bfloat16),
                   preferred_element_type=jnp.float32) + b3


if __name__ == "__main__":
    key = jax.random.PRNGKey(0)
    key, kx1, kx2 = jax.random.split(key, 3)

    raw = init_raw_params(key)
    packed = pack_params(raw)

    # Small batch (single tile, TM = 8).
    B1 = 8
    x1 = jax.random.normal(kx1, (B1, 768), jnp.float32)
    out1 = jax.block_until_ready(eight_class_model_forward(x1, packed))
    ref1 = reference_forward(x1, raw)
    assert out1.shape == (B1, 8), out1.shape
    assert jnp.allclose(out1, ref1, atol=1e-2, rtol=1e-2), "mismatch vs reference (B=8)"

    # Larger batch exercising batch tiling + padding (grid of 2 tiles of 256).
    B2 = 300
    x2 = jax.random.normal(kx2, (B2, 768), jnp.float32)
    out2 = jax.block_until_ready(eight_class_model_forward(x2, packed))
    ref2 = reference_forward(x2, raw)
    assert out2.shape == (B2, 8), out2.shape
    assert jnp.allclose(out2, ref2, atol=1e-2, rtol=1e-2), "mismatch vs reference (B=300)"

    print("KERNEL_OK")
</pallas_src>

<mosaic_0001>
module attributes {stable_mosaic.version = 11 : i64} {
  func.func @mlp_kernel(%arg0: i32, %arg1: memref<8x768xbf16, #tpu.memory_space<vmem>>, %arg2: memref<768x128xbf16, #tpu.memory_space<vmem>>, %arg3: memref<2x128x128xbf16, #tpu.memory_space<vmem>>, %arg4: memref<3x128xf32, #tpu.memory_space<vmem>>, %arg5: memref<8x128xf32, #tpu.memory_space<vmem>>) attributes {dimension_semantics = [#tpu.dimension_semantics<parallel>], iteration_bounds = array<i64: 1>, scalar_prefetch = 0 : i64, scratch_operands = 0 : i64, tpu.core_type = #tpu.core_type<tc>, window_params = [{transform_indices = @transform_0, window_bounds = array<i64: 8, 768>}, {pipeline_mode = #tpu.pipeline_mode<synchronous>, transform_indices = @transform_1, window_bounds = array<i64: 768, 128>}, {pipeline_mode = #tpu.pipeline_mode<synchronous>, transform_indices = @transform_2, window_bounds = array<i64: 2, 128, 128>}, {pipeline_mode = #tpu.pipeline_mode<synchronous>, transform_indices = @transform_3, window_bounds = array<i64: 3, 128>}, {transform_indices = @transform_4, window_bounds = array<i64: 8, 128>}]} {
    %c0 = arith.constant 0 : index
    %c0_0 = arith.constant 0 : index
    %0 = vector.load %arg1[%c0, %c0_0] : memref<8x768xbf16, #tpu.memory_space<vmem>>, vector<8x768xbf16>
    %c0_1 = arith.constant 0 : index
    %c0_2 = arith.constant 0 : index
    %1 = vector.load %arg4[%c0_1, %c0_2] : memref<3x128xf32, #tpu.memory_space<vmem>>, vector<3x128xf32>
    %2 = vector.extract_strided_slice %1 {offsets = [0, 0], sizes = [1, 128], strides = [1, 1]} : vector<3x128xf32> to vector<1x128xf32>
    %3 = vector.extract_strided_slice %1 {offsets = [1, 0], sizes = [1, 128], strides = [1, 1]} : vector<3x128xf32> to vector<1x128xf32>
    %4 = vector.extract_strided_slice %1 {offsets = [2, 0], sizes = [1, 128], strides = [1, 1]} : vector<3x128xf32> to vector<1x128xf32>
    %c0_3 = arith.constant 0 : index
    %c0_4 = arith.constant 0 : index
    %5 = vector.load %arg2[%c0_3, %c0_4] : memref<768x128xbf16, #tpu.memory_space<vmem>>, vector<768x128xbf16>
    %cst = arith.constant dense<0.000000e+00> : vector<8x128xf32>
    %6 = tpu.matmul %0, %5, %cst {dimension_numbers = #tpu.dot_dimension_numbers<[1], [0], [0], [1], [0, 0, 1, 1], [], []>} : vector<8x768xbf16>, vector<768x128xbf16>, vector<8x128xf32> -> vector<8x128xf32>
    %7 = vector.broadcast %2 : vector<1x128xf32> to vector<8x128xf32>
    %8 = arith.addf %6, %7 : vector<8x128xf32>
    %cst_5 = arith.constant 0.000000e+00 : f32
    %9 = vector.broadcast %cst_5 : f32 to vector<8x128xf32>
    %10 = arith.maximumf %8, %9 : vector<8x128xf32>
    %11 = arith.truncf %10 : vector<8x128xf32> to vector<8x128xbf16>
    %c0_6 = arith.constant 0 : index
    %c0_7 = arith.constant 0 : index
    %c0_8 = arith.constant 0 : index
    %12 = vector.load %arg3[%c0_6, %c0_7, %c0_8] : memref<2x128x128xbf16, #tpu.memory_space<vmem>>, vector<1x128x128xbf16>
    %13 = vector.shape_cast %12 : vector<1x128x128xbf16> to vector<128x128xbf16>
    %cst_9 = arith.constant dense<0.000000e+00> : vector<8x128xf32>
    %14 = tpu.matmul %11, %13, %cst_9 {dimension_numbers = #tpu.dot_dimension_numbers<[1], [0], [0], [1], [0, 0, 1, 1], [], []>} : vector<8x128xbf16>, vector<128x128xbf16>, vector<8x128xf32> -> vector<8x128xf32>
    %15 = vector.broadcast %3 : vector<1x128xf32> to vector<8x128xf32>
    %16 = arith.addf %14, %15 : vector<8x128xf32>
    %cst_10 = arith.constant 0.000000e+00 : f32
    %17 = vector.broadcast %cst_10 : f32 to vector<8x128xf32>
    %18 = arith.maximumf %16, %17 : vector<8x128xf32>
    %19 = arith.truncf %18 : vector<8x128xf32> to vector<8x128xbf16>
    %c1 = arith.constant 1 : index
    %c0_11 = arith.constant 0 : index
    %c0_12 = arith.constant 0 : index
    %20 = vector.load %arg3[%c1, %c0_11, %c0_12] : memref<2x128x128xbf16, #tpu.memory_space<vmem>>, vector<1x128x128xbf16>
    %21 = vector.shape_cast %20 : vector<1x128x128xbf16> to vector<128x128xbf16>
    %cst_13 = arith.constant dense<0.000000e+00> : vector<8x128xf32>
    %22 = tpu.matmul %19, %21, %cst_13 {dimension_numbers = #tpu.dot_dimension_numbers<[1], [0], [0], [1], [0, 0, 1, 1], [], []>} : vector<8x128xbf16>, vector<128x128xbf16>, vector<8x128xf32> -> vector<8x128xf32>
    %23 = vector.broadcast %4 : vector<1x128xf32> to vector<8x128xf32>
    %24 = arith.addf %22, %23 : vector<8x128xf32>
    %c0_14 = arith.constant 0 : index
    %c0_15 = arith.constant 0 : index
    %25 = vector.load %arg5[%c0_14, %c0_15] : memref<8x128xf32, #tpu.memory_space<vmem>>, vector<8x128xf32>
    tpu.vector_store %arg5[%c0_14, %c0_15], %24 {strides = array<i32>} : memref<8x128xf32, #tpu.memory_space<vmem>>, vector<8x128xf32>,
    return
  }
  func.func @transform_0(%arg0: i32) -> (i32, i32) {
    %c0_i32 = arith.constant 0 : i32
    %c0_i32_0 = arith.constant 0 : i32
    return %arg0, %c0_i32 : i32, i32
  }
  func.func @transform_1(%arg0: i32) -> (i32, i32) {
    %c0_i32 = arith.constant 0 : i32
    %c0_i32_0 = arith.constant 0 : i32
    %c0_i32_1 = arith.constant 0 : i32
    return %c0_i32, %c0_i32_0 : i32, i32
  }
  func.func @transform_2(%arg0: i32) -> (i32, i32, i32) {
    %c0_i32 = arith.constant 0 : i32
    %c0_i32_0 = arith.constant 0 : i32
    %c0_i32_1 = arith.constant 0 : i32
    %c0_i32_2 = arith.constant 0 : i32
    return %c0_i32, %c0_i32_0, %c0_i32_1 : i32, i32, i32
  }
  func.func @transform_3(%arg0: i32) -> (i32, i32) {
    %c0_i32 = arith.constant 0 : i32
    %c0_i32_0 = arith.constant 0 : i32
    %c0_i32_1 = arith.constant 0 : i32
    return %c0_i32, %c0_i32_0 : i32, i32
  }
  func.func @transform_4(%arg0: i32) -> (i32, i32) {
    %c0_i32 = arith.constant 0 : i32
    %c0_i32_0 = arith.constant 0 : i32
    return %arg0, %c0_i32 : i32, i32
  }
}

</mosaic_0001>

<bundles_post_ra>
// kernel: tpu_custom_call.1
= control target key start
LH: loop header
LB: loop body
LE: loop exit
PB: predicated region body
PF: predicated region fallthrough
CT: control target
= control target key end

     0   :  { %9 = vsyncpa [#allocation3], 0  ;;  %s1253_s0 = inlined_call_operand.hbm [shape: bf16[8,768], index: 0, kind: input, shape index: {}]   ;;  %s1254_s1 = inlined_call_operand.hbm [shape: bf16[768,128], index: 1, kind: input, shape index: {}]   ;;  %s1255_s2 = inlined_call_operand.hbm [shape: bf16[2,128,128], index: 2, kind: input, shape index: {}]   ;;  %s1256_s3 = inlined_call_operand.vmem [shape: f32[3,128], index: 3, kind: input, shape index: {}]   ;;  %s1257_s4 = inlined_call_operand.hbm [shape: f32[8,128], index: 4, kind: output, shape index: {}]  }
   0x1   :  { %10 = vsyncpa [#allocation6], 0 }
   0x2   :  { %11 = vsyncpa [#allocation4], 0  ;;  %s1187_s15 = smov [#allocation5]  }
   0x3   :  { %s27_s16 = sshll.u32 %s1187_s15, 4  ;;  %s28_s16 = int_to_ptr.vmem [resolvable:$true] %s27_s16 }
   0x4   :  { %s1109_s17 = scalar_lea.vmem %s28_s16, 6144  ;;  %p1114_p1 = scmp.lt.s32.totalorder %s28_s16, %s28_s16 }
   0x5   :  { %p1110_p0 = scmp.ne.s32.totalorder %s28_s16, %s1109_s17  ;;  %p1115_p2 = scmp.lt.s32.totalorder %s1109_s17, %s1109_s17 }
   0x7   :  { %p1116_p3 = por %p1115_p2, %p1114_p1 }
   0x9   :  { %p1117_p4 = pnand %p1116_p3, %p1110_p0 }
   0xb   :  { %1120 = shalt.err (!%p1117_p4)
}
   0xc   :  { %s1188_s18 = smov 64   ;;  %s1189_s19 = smov 4  }
   0xd   :  { %33 = dma.hbm_to_vmem [thread:$0]  %s1254_s1, 6144, %s28_s16, [#allocation6], %s1188_s18, %s1188_s18, %s1189_s19  }
   0xe   :  { %s1190_s22 = smov [#allocation2]   ;;  %s1191_s24 = smov [#allocation7]  }
   0xf   :  { %s18_s23 = sshll.u32 %s1190_s22, 4  ;;  %s39_s25 = sshll.u32 %s1191_s24, 4  ;;  %s19_s23 = int_to_ptr.vmem [resolvable:$true] %s18_s23  ;;  %s40_s25 = int_to_ptr.vmem [resolvable:$true] %s39_s25 }
  0x10   :  { %s1129_s26 = scalar_lea.vmem %s19_s23, 384  ;;  %p1134_p6 = scmp.lt.s32.totalorder %s19_s23, %s19_s23 }
  0x11   :  { %p1130_p5 = scmp.ne.s32.totalorder %s19_s23, %s1129_s26  ;;  %p1135_p7 = scmp.lt.s32.totalorder %s1129_s26, %s1129_s26 }
  0x13   :  { %p1136_p8 = por %p1135_p7, %p1134_p6 }
  0x15   :  { %p1137_p9 = pnand %p1136_p8, %p1130_p5 }
  0x17   :  { %1140 = shalt.err (!%p1137_p9)
}
  0x18   :  { %21 = dma.hbm_to_vmem [thread:$0]  %s1253_s0, 384, %s19_s23, [#allocation3]  }
  0x19   :  { %s1149_s29 = scalar_lea.vmem %s40_s25, 2048  ;;  %p1154_p11 = scmp.lt.s32.totalorder %s40_s25, %s40_s25 }
  0x1a   :  { %p1150_p10 = scmp.ne.s32.totalorder %s40_s25, %s1149_s29  ;;  %p1155_p12 = scmp.lt.s32.totalorder %s1149_s29, %s1149_s29 }
  0x1c   :  { %p1156_p13 = por %p1155_p12, %p1154_p11 }
  0x1e   :  { %p1157_p0 = pnand %p1156_p13, %p1150_p10 }
  0x20   :  { %1160 = shalt.err (!%p1157_p0)
}
  0x21   :  { %45 = dma.hbm_to_vmem [thread:$0]  %s1255_s2, 2048, %s40_s25, [#allocation6], %s1188_s18, %s1188_s18, %s1189_s19  }
  0x22   :  { %1181 = dma.done.wait [#allocation3], 384  }
  0x23   :  { %1182 = vsyncadd [#allocation3], 4294966912 }
  0x24   :  { %1183 = dma.done.wait [#allocation6], 8192  }
  0x25   :  { %1184 = vsyncadd [#allocation6], 4294959104  ;;  %v1031_v0 = vld [vmem:[#allocation5 + $0x78] sm:$0xff]   ;;  %v1035_v4 = vld [vmem:[#allocation5 + $0x70] sm:$0xff]   ;;  %v1192_v58 = vmov 0.0   ;;  %vm1193_vm0 = vmmov 0  }
  0x26   :  { %v1032_v1 = vld [vmem:[#allocation5 + $0x38] sm:$0xff]   ;;  %899 = vmatprep.subr.bf16.mxu0 %v1031_v0  ;;  %v1036_v5 = vld [vmem:[#allocation5 + $0x30] sm:$0xff]   ;;  %v1039_v8 = vld [vmem:[#allocation5 + $0x68] sm:$0xff]  }
  0x27   :  { %v1033_v2 = vld [vmem:[#allocation5 + $0xf8] sm:$0xff]   ;;  %900 = vmatpush3.bf16.msra.mxu0 %v1032_v1  ;;  %v1037_v6 = vld [vmem:[#allocation5 + $0xf0] sm:$0xff]   ;;  %v1040_v9 = vld [vmem:[#allocation5 + $0x28] sm:$0xff]  }
  0x28   :  { %v1034_v3 = vld [vmem:[#allocation5 + $0xb8] sm:$0xff]   ;;  %921 = vmatprep.subr.bf16.mxu1 %v1033_v2  ;;  %901 = vmatprep.subr.bf16.mxu0 %v1035_v4  ;;  %v1038_v7 = vld [vmem:[#allocation5 + $0xb0] sm:$0xff]   ;;  %v1041_v10 = vld [vmem:[#allocation5 + $0xe8] sm:$0xff]  }
  0x29   :  { %922 = vmatpush3.bf16.msra.mxu1 %v1034_v3  ;;  %v1042_v11 = vld [vmem:[#allocation5 + $0xa8] sm:$0xff]   ;;  %v1043_v12 = vld [vmem:[#allocation5 + $0x60] sm:$0xff]   ;;  %v1047_v16 = vld [vmem:[#allocation5 + $0x58] sm:$0xff]  }
  0x2a   :  { %923 = vmatprep.subr.bf16.mxu1 %v1037_v6  ;;  %v1044_v13 = vld [vmem:[#allocation5 + $0x20] sm:$0xff]   ;;  %v1048_v17 = vld [vmem:[#allocation5 + $0x18] sm:$0xff]   ;;  %v1051_v20 = vld [vmem:[#allocation5 + $0x50] sm:$0xff]  }
  0x2b   :  { %902 = vmatpush3.bf16.msra.mxu0 %v1036_v5  ;;  %v1045_v14 = vld [vmem:[#allocation5 + $0xe0] sm:$0xff]   ;;  %v1049_v18 = vld [vmem:[#allocation5 + $0xd8] sm:$0xff]   ;;  %v1052_v21 = vld [vmem:[#allocation5 + $0x10] sm:$0xff]  }
  0x2c   :  { %903 = vmatprep.subr.bf16.mxu0 %v1039_v8  ;;  %v1046_v15 = vld [vmem:[#allocation5 + $0xa0] sm:$0xff]   ;;  %v1050_v19 = vld [vmem:[#allocation5 + $0x98] sm:$0xff]   ;;  %v1053_v22 = vld [vmem:[#allocation5 + $0xd0] sm:$0xff]  }
  0x2d   :  { %924 = vmatpush3.bf16.msra.mxu1 %v1038_v7  ;;  %v1054_v23 = vld [vmem:[#allocation5 + $0x90] sm:$0xff]   ;;  %v1055_v24 = vld [vmem:[#allocation5 + $0x48] sm:$0xff]   ;;  %v1059_v28 = vld [vmem:[#allocation5 + $0x40] sm:$0xff]  }
  0x2e   :  { %925 = vmatprep.subr.bf16.mxu1 %v1041_v10  ;;  %v1056_v25 = vld [vmem:[#allocation5 + $0x8] sm:$0xff]   ;;  %v1060_v29 = vld [vmem:[#allocation5] sm:$0xff]   ;;  %v1065_v35 = vld [vmem:[#allocation5 + $0x178] sm:$0xff]  }
  0x2f   :  { %904 = vmatpush3.bf16.msra.mxu0 %v1040_v9  ;;  %v1057_v26 = vld [vmem:[#allocation5 + $0xc8] sm:$0xff]   ;;  %v1061_v30 = vld [vmem:[#allocation5 + $0xc0] sm:$0xff]   ;;  %v59_v36 = vld [vmem:[#allocation2 + $0x8] sm:$0xff] }
  0x30   :  { %905 = vmatprep.subr.bf16.mxu0 %v1043_v12  ;;  %v1058_v27 = vld [vmem:[#allocation5 + $0x88] sm:$0xff]   ;;  %v1064_v34 = vld [vmem:[#allocation5 + $0x80] sm:$0xff]   ;;  %v831_v37 = vcombine.low %v59_v36, %v59_v36  ;;  %v832_v38 = vcombine.high %v59_v36, %v59_v36  ;;  %v1068_v39 = vld [vmem:[#allocation5 + $0x138] sm:$0xff]  }
  0x31   :  { %926 = vmatpush3.bf16.msra.mxu1 %v1042_v11  ;;  %v58_v31 = vld [vmem:[#allocation2] sm:$0xff]  ;;  %v1069_v40 = vld [vmem:[#allocation5 + $0x170] sm:$0xff]   ;;  %v1073_v44 = vld [vmem:[#allocation5 + $0x160] sm:$0xff]  }
  0x32   :  { %927 = vmatprep.subr.bf16.mxu1 %v1045_v14  ;;  %v829_v32 = vcombine.low %v58_v31, %v58_v31  ;;  %v830_v33 = vcombine.high %v58_v31, %v58_v31  ;;  %543 = vmatprep.mubr.bf16.mxu1 %v832_v38  ;;  %v1070_v41 = vld [vmem:[#allocation5 + $0x130] sm:$0xff]   ;;  %v1071_v42 = vld [vmem:[#allocation5 + $0x168] sm:$0xff]   ;;  %v1074_v45 = vld [vmem:[#allocation5 + $0x120] sm:$0xff]  }
  0x33   :  { %906 = vmatpush3.bf16.msra.mxu0 %v1044_v13  ;;  %v1072_v43 = vld [vmem:[#allocation5 + $0x128] sm:$0xff]   ;;  %v1075_v46 = vld [vmem:[#allocation5 + $0x158] sm:$0xff]   ;;  %v1077_v48 = vld [vmem:[#allocation5 + $0x150] sm:$0xff]  }
  0x34   :  { %907 = vmatprep.subr.bf16.mxu0 %v1047_v16  ;;  %503 = vmatprep.mubr.bf16.mxu0 %v830_v33  ;;  %v1076_v47 = vld [vmem:[#allocation5 + $0x118] sm:$0xff]   ;;  %v1078_v51 = vld [vmem:[#allocation5 + $0x110] sm:$0xff]   ;;  %v1079_v52 = vld [vmem:[#allocation5 + $0x148] sm:$0xff]   ;;  %v158_v16 = vlaneseq }
  0x35   :  { %928 = vmatpush3.bf16.msra.mxu1 %v1046_v15  ;;  %v60_v49 = vld [vmem:[#allocation2 + $0x10] sm:$0xff]  ;;  %v1080_v53 = vld [vmem:[#allocation5 + $0x108] sm:$0xff]   ;;  %v1081_v54 = vld [vmem:[#allocation5 + $0x140] sm:$0xff]  }
  0x36   :  { %929 = vmatprep.subr.bf16.mxu1 %v1049_v18  ;;  %v834_v50 = vcombine.high %v60_v49, %v60_v49  ;;  %v1082_v55 = vld [vmem:[#allocation5 + $0x100] sm:$0xff]   ;;  %v833_v56 = vcombine.low %v60_v49, %v60_v49  ;;  %v1085_v57 = vld [vmem:[#allocation7 + $0x38] sm:$0xff]   ;;  %v1086_v59 = vld [vmem:[#allocation7 + $0x30] sm:$0xff]  }
  0x37   :  { %908 = vmatpush3.bf16.msra.mxu0 %v1048_v17  ;;  %v1087_v60 = vld [vmem:[#allocation7 + $0x28] sm:$0xff]   ;;  %v1088_v61 = vld [vmem:[#allocation7 + $0x20] sm:$0xff]   ;;  %v1089_v62 = vld [vmem:[#allocation7 + $0x18] sm:$0xff]   ;;  %v159_v17 = vshrl.u32 %v158_v16, 7 }
  0x38   :  { %909 = vmatprep.subr.bf16.mxu0 %v1051_v20  ;;  %v1090_v63 = vld [vmem:[#allocation7 + $0x10] sm:$0xff]   ;;  %v1091_v0 = vld [vmem:[#allocation7 + $0x8] sm:$0xff]   ;;  %v1092_v1 = vld [vmem:[#allocation7] sm:$0xff]  }
  0x39   :  { %930 = vmatpush3.bf16.msra.mxu1 %v1050_v19  ;;  %v1093_v2 = vld [vmem:[#allocation7 + $0x78] sm:$0xff]   ;;  %v1094_v3 = vld [vmem:[#allocation7 + $0x70] sm:$0xff]   ;;  %v1095_v4 = vld [vmem:[#allocation7 + $0x68] sm:$0xff]   ;;  %v160_v18 = vsub.s32 0, %v159_v17 }
  0x3a   :  { %931 = vmatprep.subr.bf16.mxu1 %v1053_v22  ;;  %v1096_v5 = vld [vmem:[#allocation7 + $0x60] sm:$0xff]   ;;  %v1097_v6 = vld [vmem:[#allocation7 + $0x58] sm:$0xff]   ;;  %v1098_v7 = vld [vmem:[#allocation7 + $0x50] sm:$0xff]  }
  0x3b   :  { %910 = vmatpush3.bf16.msra.mxu0 %v1052_v21  ;;  %v61_v19 = vld [vmem:[%s1256_s3] sm:$0x7]  ;;  %s1194_s3 = smov [#allocation8]  }
  0x3c   :  { %911 = vmatprep.subr.bf16.mxu0 %v1055_v24  ;;  %v161_v20 = vrot.slane %v61_v19, %v160_v18  ;;  %v1099_v33 = vld [vmem:[#allocation7 + $0x48] sm:$0xff]   ;;  %s819_s5 = sshll.u32 %s1194_s3, 4  ;;  %s820_s5 = int_to_ptr.vmem [resolvable:$true] %s819_s5 }
  0x3d   :  { %932 = vmatpush3.bf16.msra.mxu1 %v1054_v23  ;;  %s1161_s6 = scalar_lea.vmem %s820_s5, 128  ;;  %p1166_p2 = scmp.lt.s32.totalorder %s820_s5, %s820_s5 }
  0x3e   :  { %933 = vmatprep.subr.bf16.mxu1 %v1057_v26  ;;  %p1162_p1 = scmp.ne.s32.totalorder %s820_s5, %s1161_s6  ;;  %p1167_p3 = scmp.lt.s32.totalorder %s1161_s6, %s1161_s6 }
  0x3f   :  { %912 = vmatpush3.bf16.msra.mxu0 %v1056_v25 }
  0x40   :  { %913 = vmatprep.subr.bf16.mxu0 %v1059_v28  ;;  %p1168_p4 = por %p1167_p3, %p1166_p2 }
  0x41   :  { %934 = vmatpush3.bf16.msra.mxu1 %v1058_v27 }
  0x42   :  { %935 = vmatprep.subr.bf16.mxu1 %v1061_v30  ;;  %p1169_p5 = pnand %p1168_p4, %p1162_p1 }
  0x43   :  { %914 = vmatpush3.bf16.msra.mxu0 %v1060_v29 }
  0x44   :  { %943 = vmatprep.subr.bf16.mxu0 %v1065_v35  ;;  %v611_v35 = vsub.s32 1, %v159_v17 }
  0x45   :  { %936 = vmatpush3.bf16.msra.mxu1 %v1064_v34  ;;  %v1100_v34 = vld [vmem:[#allocation7 + $0x40] sm:$0xff]  }
  0x46   :  { %504 = vmatmul.mubr.bf16.vlgmr.msra.gmra.mxu0 %v829_v32  ;;  %983 = vmatprep.subr.bf16.mxu1 %v1192_v58  ;;  %v612_v36 = vrot.slane %v61_v19, %v611_v35 }
  0x47   :  { %944 = vmatpush3.bf16.msra.mxu0 %v1068_v39  ;;  %583 = vmatprep.mubr.bf16.mxu0 %v834_v50 }
  0x48   :  { %544 = vmatmul.mubr.bf16.vlgmr.msra.gmra.mxu1 %v831_v37  ;;  %945 = vmatprep.subr.bf16.mxu0 %v1069_v40 }
  0x49   :  { %984 = vmatpush3.bf16.msra.mxu1 %v1085_v57  ;;  %999 = vmatprep.mubr.msk.bf16.mxu1 %vm1193_vm0, %v1192_v58 }
  0x4a   :  { %985 = vmatprep.subr.bf16.mxu1 %v1192_v58 }
  0x4b   :  { %946 = vmatpush3.bf16.msra.mxu0 %v1070_v41 }
  0x4c   :  { %947 = vmatprep.subr.bf16.mxu0 %v1071_v42 }
  0x4d   :  { %986 = vmatpush3.bf16.msra.mxu1 %v1086_v59 }
  0x4e   :  { %987 = vmatprep.subr.bf16.mxu1 %v1192_v58 }
  0x4f   :  { %948 = vmatpush3.bf16.msra.mxu0 %v1072_v43 }
  0x50   :  { %949 = vmatprep.subr.bf16.mxu0 %v1073_v44  ;;  %v722_v44 = vsub.s32 2, %v159_v17 }
  0x51   :  { %988 = vmatpush3.bf16.msra.mxu1 %v1087_v60 }
  0x52   :  { %989 = vmatprep.subr.bf16.mxu1 %v1192_v58 }
  0x53   :  { %950 = vmatpush3.bf16.msra.mxu0 %v1074_v45  ;;  %v723_v45 = vrot.slane %v61_v19, %v722_v44 }
  0x54   :  { %951 = vmatprep.subr.bf16.mxu0 %v1075_v46 }
  0x55   :  { %990 = vmatpush3.bf16.msra.mxu1 %v1088_v61 }
  0x56   :  { %991 = vmatprep.subr.bf16.mxu1 %v1192_v58 }
  0x57   :  { %952 = vmatpush3.bf16.msra.mxu0 %v1076_v47 }
  0x58   :  { %953 = vmatprep.subr.bf16.mxu0 %v1077_v48 }
  0x59   :  { %992 = vmatpush3.bf16.msra.mxu1 %v1089_v62 }
  0x5a   :  { %993 = vmatprep.subr.bf16.mxu1 %v1192_v58 }
  0x5b   :  { %954 = vmatpush3.bf16.msra.mxu0 %v1078_v51 }
  0x5c   :  { %955 = vmatprep.subr.bf16.mxu0 %v1079_v52 }
  0x5d   :  { %994 = vmatpush3.bf16.msra.mxu1 %v1090_v63 }
  0x5e   :  { %995 = vmatprep.subr.bf16.mxu1 %v1192_v58 }
  0x5f   :  { %956 = vmatpush3.bf16.msra.mxu0 %v1080_v53 }
  0x60   :  { %957 = vmatprep.subr.bf16.mxu0 %v1081_v54 }
  0x61   :  { %996 = vmatpush3.bf16.msra.mxu1 %v1091_v0 }
  0x62   :  { %997 = vmatprep.subr.bf16.mxu1 %v1192_v58 }
  0x63   :  { %958 = vmatpush3.bf16.msra.mxu0 %v1082_v55 }
  0x64   :  { %1003 = vmatprep.subr.bf16.mxu0 %v1192_v58 }
  0x65   :  { %998 = vmatpush3.bf16.msra.mxu1 %v1092_v1 }
  0x66   :  { %584 = vmatmul.mubr.bf16.vlgmr.msra.gmra.mxu0 %v833_v56 }
  0x67   :  { %1019 = vmatprep.mubr.msk.bf16.mxu0 %vm1193_vm0, %v1192_v58  ;;  %1004 = vmatpush3.bf16.msra.mxu0 %v1093_v2 }
  0x68   :  { %1005 = vmatprep.subr.bf16.mxu0 %v1192_v58 }
  0x6b   :  { %1006 = vmatpush3.bf16.msra.mxu0 %v1094_v3 }
  0x6c   :  { %1007 = vmatprep.subr.bf16.mxu0 %v1192_v58 }
  0x6f   :  { %1008 = vmatpush3.bf16.msra.mxu0 %v1095_v4 }
  0x70   :  { %1009 = vmatprep.subr.bf16.mxu0 %v1192_v58 }
  0x73   :  { %1010 = vmatpush3.bf16.msra.mxu0 %v1096_v5 }
  0x74   :  { %1011 = vmatprep.subr.bf16.mxu0 %v1192_v58 }
  0x77   :  { %1012 = vmatpush3.bf16.msra.mxu0 %v1097_v6 }
  0x78   :  { %1013 = vmatprep.subr.bf16.mxu0 %v1192_v58 }
  0x7b   :  { %1014 = vmatpush3.bf16.msra.mxu0 %v1098_v7 }
  0x7c   :  { %1015 = vmatprep.subr.bf16.mxu0 %v1192_v58 }
  0x7f   :  { %1016 = vmatpush3.bf16.msra.mxu0 %v1099_v33 }
  0x80   :  { %1017 = vmatprep.subr.bf16.mxu0 %v1192_v58 }
  0x83   :  { %1018 = vmatpush3.bf16.msra.mxu0 %v1100_v34 }
 0x106   :  { %v915_v8 = vpop.f32.mrf.mxu0 }
 0x108   :  { %v916_v9 = vpop.f32.mrf.mxu0  ;;  %v937_v10 = vpop.f32.mrf.mxu1 }
 0x109   :  { %v917_v21 = vadd.f32 %v916_v9, %v915_v8 }
 0x10a   :  { %v918_v11 = vpop.f32.mrf.mxu0  ;;  %v938_v12 = vpop.f32.mrf.mxu1 }
 0x10b   :  { %v506_v22 = vadd.f32 %v917_v21, %v161_v20  ;;  %v939_v23 = vadd.f32 %v938_v12, %v937_v10 }
 0x10c   :  { %v919_v13 = vpop.f32.mrf.mxu0  ;;  %v940_v14 = vpop.f32.mrf.mxu1 }
 0x10d   :  { %v546_v26 = vadd.f32 %v939_v23, %v506_v22 }
 0x10e   :  { %v941_v15 = vpop.f32.mrf.mxu1 }
 0x126   :  { %v959_v24 = vpop.f32.mrf.mxu0 }
 0x128   :  { %v960_v25 = vpop.f32.mrf.mxu0 }
 0x129   :  { %v961_v27 = vadd.f32 %v960_v25, %v959_v24 }
 0x12a   :  { %v962_v28 = vpop.f32.mrf.mxu0 }
 0x12b   :  { %v586_v29 = vadd.f32 %v961_v27, %v546_v26 }
 0x12c   :  { %v963_v30 = vpop.f32.mrf.mxu0 }
 0x12d   :  { %v591_v31 = vmax.f32 %v586_v29, 0.0 }
 0x12f   :  { %v592_v32 = vpack.c.bf16 %v591_v31, %v591_v31 }
 0x131   :  { %1000 = vmatmul.mubr.bf16.vlgmr.msra.gmra.mxu1 %v592_v32 }
 0x1f1   :  { %v695_v37 = vpop.f32.mrf.mxu1 }
 0x1f2   :  { %v696_v38 = vadd.f32 %v695_v37, %v612_v36 }
 0x1f3   :  { %v1001_v39 = vpop.f32.mrf.mxu1 }
 0x1f4   :  { %v701_v40 = vmax.f32 %v696_v38, 0.0 }
 0x1f5   :  { %v698_v41 = vpop.f32.mrf.mxu1 }
 0x1f6   :  { %v702_v42 = vpack.c.bf16 %v701_v40, %v701_v40 }
 0x1f7   :  { %v1002_v43 = vpop.f32.mrf.mxu1 }
 0x1f8   :  { %1020 = vmatmul.mubr.bf16.vlgmr.msra.gmra.mxu0 %v702_v42 }
 0x2b8   :  { %v806_v46 = vpop.f32.mrf.mxu0 }
 0x2b9   :  { %v807_v47 = vadd.f32 %v806_v46, %v723_v45 }
 0x2ba   :  { %v1021_v48 = vpop.f32.mrf.mxu0 }
 0x2bb   :  { %812 = vst [vmem:[#allocation8] sm:$0xff] %v807_v47 }
 0x2bc   :  { %v809_v49 = vpop.f32.mrf.mxu0 }
 0x2bd   :  { %1172 = shalt.err (!%p1169_p5)
}
 0x2be   :  { %822 = dma.vmem_to_hbm [thread:$0]  %s820_s5, 128, %s1257_s4, [#allocation4]   ;;  %v1022_v50 = vpop.f32.mrf.mxu0 }
 0x2bf   :  { %1185 = dma.done.wait [#allocation4], 128  }
 0x2c0   :  { %1186 = vsyncadd [#allocation4], 4294967168 }
 0x2c1   :  { %826 = vsyncpa [#allocation3], 1 }
 0x2c2   :  { %827 = vsyncpa [#allocation6], 1 }
 0x2c3   :  { %828 = vsyncpa [#allocation4], 1 }

</bundles_post_ra>
